<compile_context>
chip_gen: v7x
topology: tpu7x:2x2x1
jax: 0.10.0
libtpu: 0.0.40
codegen_flags: <defaults>
</compile_context>

<pallas_src>
import functools

import jax
import jax.numpy as jnp
from jax.experimental import pallas as pl
from jax.experimental.pallas import tpu as pltpu

EPS = 1e-5  # nn.GroupNorm default eps


def _conv1d_gn_mish_kernel(x_ref, w_ref, p_ref, avg_ref, o_ref, *,
                           seq_len, padding, matmul_dtype):
    # x_ref:   (TB, C_in, L)     x.dtype   NCL block read straight from HBM
    # w_ref:   (K, C_in, C_out)  bf16      conv taps, (tap, in, out)
    # p_ref:   (3, C_out)        f32       rows: conv bias, GN gamma, GN beta
    # avg_ref: (C_out, C_out)    f32       block-diag group-averaging matrix (already / (cpg*L))
    # o_ref:   (TB, C_out, L)    out dtype NCL block
    tb, c_in, _ = x_ref.shape
    num_taps = w_ref.shape[0]
    c_out = o_ref.shape[1]
    rows = tb * seq_len

    # ---- NCL -> lane-dense (rows, C_in): in-kernel XLU transpose (no extra HBM pass).
    xb = jnp.transpose(x_ref[...], (0, 2, 1)).reshape(rows, c_in).astype(matmul_dtype)

    p = p_ref[...]                                          # (3, C_out) f32
    bias, gamma, beta = p[0:1, :], p[1:2, :], p[2:3, :]

    # Position of each row within its sequence (conv halo mask), built in-kernel.
    lpos = jax.lax.broadcasted_iota(jnp.int32, (tb, seq_len, 1), 1).reshape(rows, 1)

    # ---- Conv1d ("same", stride 1): K lane-dense MXU taps, local f32 accumulator.
    # Tap k needs x[row + d] @ w[k], d = k - padding.  Shift the f32 matmul OUTPUT
    # by d rows with an XLU sublane rotate and zero rows whose source lies outside
    # this row's sequence (this also kills the cross-batch wraparound rows).
    acc = None
    for k in range(num_taps):
        d = k - padding
        y = jnp.dot(xb, w_ref[k], preferred_element_type=jnp.float32)   # (rows, C_out)
        if d != 0:
            y = pltpu.roll(y, shift=(-d) % rows, axis=0)
            src = lpos + d
            y = jnp.where((src >= 0) & (src < seq_len), y, 0.0)
        acc = y if acc is None else acc + y
    acc = acc + bias

    # ---- GroupNorm (per batch element, per contiguous channel group), f32.
    acc3 = acc.reshape(tb, seq_len, c_out)                  # leading-dim split (L % 8 == 0)
    s = jnp.sum(acc3, axis=1)                               # (TB, C_out) sublane reduce over L
    q = jnp.sum(acc3 * acc3, axis=1)                        # (TB, C_out)
    # One tiny matmul both group-reduces and broadcasts back per channel (s & q fused).
    m2 = jnp.dot(jnp.concatenate([s, q], axis=0), avg_ref[...],
                 preferred_element_type=jnp.float32)        # (2*TB, C_out)
    mean, mean_sq = m2[:tb, :], m2[tb:, :]
    var = jnp.maximum(mean_sq - mean * mean, 0.0)           # clamp cancellation noise
    scale = gamma * jax.lax.rsqrt(var + EPS)                # gamma folded into one scale
    shift = beta - mean * scale
    z = acc3 * scale[:, None, :] + shift[:, None, :]        # (TB, L, C_out)

    # ---- Mish with a single exp: z*tanh(softplus(z)) = z*u/(u+2), u = t(t+2), t = e^z.
    # exp argument clamped so the unselected branch stays finite (no inf*0 = NaN).
    t = jnp.exp(jnp.minimum(z, 20.0))
    u = t * (t + 2.0)
    mish = z * u * pl.reciprocal(u + 2.0, approx=True)
    res = jnp.where(z > 20.0, z, mish)                      # mish(z) == z in f32 for z > 20

    # ---- Back to NCL and store (transpose stays in VMEM, no wrapper pass).
    o_ref[...] = jnp.transpose(res, (0, 2, 1)).astype(o_ref.dtype)


def _ceil_to(v, m):
    return ((v + m - 1) // m) * m


def _vmem_capacity_bytes():
    try:
        return int(pltpu.get_tpu_info().vmem_capacity_bytes)
    except Exception:
        return 64 * 2**20          # conservative default (v7x per-TensorCore)


def _tile_bytes(sub, lane, itemsize):
    return _ceil_to(max(sub, 1), 8) * _ceil_to(max(lane, 1), 128) * itemsize


def _vmem_cost_model(c_in, c_out, length, k, in_dtype, out_dtype):
    """Returns (fixed_bytes, per_batch_bytes) of VMEM per grid step."""
    in_sz = jnp.dtype(in_dtype).itemsize
    out_sz = jnp.dtype(out_dtype).itemsize
    # Grid-invariant inputs (double-buffered by the default pipeliner).
    # TODO(synk): pipeline_mode=pl.Buffered(1) on these specs once verified on the
    # target jax version; halves this term.
    fixed = 2 * (k * _tile_bytes(c_in, c_out, 2)            # weights (bf16)
                 + _tile_bytes(3, c_out, 4)                 # bias/gamma/beta
                 + _tile_bytes(c_out, c_out, 4))            # group-averaging matrix
    per_batch = (2 * _tile_bytes(c_in, length, in_sz)       # x block (double-buffered)
                 + 2 * _tile_bytes(c_out, length, out_sz)   # out block (double-buffered)
                 + _tile_bytes(length, c_in, 6)             # transposed x: f32 + bf16 copy
                 + 3 * _tile_bytes(length, c_out, 4))       # acc / z / result live slabs
    return fixed, per_batch


def _pick_batch_tile(n, length, fixed, per_batch, budget):
    divisors = [d for d in range(1, n + 1) if n % d == 0]
    fits = [d for d in divisors if fixed + d * per_batch <= budget] or [1]
    # Prefer >=4 grid steps (both v7x TCs busy, edge DMAs hidden) as long as the
    # tile keeps >= ~512 rows; then >=2 steps; else the biggest fitting tile.
    for pred in (lambda d: n // d >= 4 and d * length >= 512,
                 lambda d: n // d >= 2,
                 lambda d: True):
        cand = [d for d in fits if pred(d)]
        if cand:
            return max(cand)
    return 1


def _vmem_limit_bytes(need, capacity):
    # Generation-aware: ~56 MiB cap on v7x (64 MiB physical), up to 100 MiB on v5e/v6e.
    hi = min(capacity - (8 << 20), 100 << 20)
    return int(min(hi, max(32 << 20, int(1.5 * need))))


def conv1d_block(x, weight, bias, gamma, beta, *, num_groups=8, stride=1,
                 padding=1, batch_tile=None, out_dtype=None,
                 matmul_dtype=jnp.bfloat16):
    """Fused Conv1d('same') -> GroupNorm -> Mish.

    x: (N, C_in, L) NCL; weight: (C_out, C_in, K) (PyTorch Conv1d layout);
    bias/gamma/beta: (C_out,).  Returns (N, C_out, L) in out_dtype (default x.dtype;
    pass jnp.bfloat16 to halve the output HBM stream on v6e/v7x if downstream allows).
    """
    n, c_in, length = x.shape
    c_out, c_in_w, k = weight.shape
    assert c_in_w == c_in
    assert c_out % num_groups == 0, "GroupNorm requires C_out % groups == 0"
    assert stride == 1, "only the module-default stride=1 is supported"
    # TODO(synk): general padding (L_out != L) / stride > 1 need a separate output
    # row space; the module defaults (k=3, s=1, p=1) are a 'same' conv.
    assert 2 * padding == k - 1, "kernel assumes a 'same' conv (e.g. k=3, p=1)"
    assert length % 8 == 0, "pad L to a multiple of 8 (TPU sublane alignment)"
    out_dtype = x.dtype if out_dtype is None else out_dtype

    capacity = _vmem_capacity_bytes()
    fixed, per_batch = _vmem_cost_model(c_in, c_out, length, k, x.dtype, out_dtype)
    budget = min(capacity - (8 << 20), 100 << 20)
    if batch_tile is None:
        tb = _pick_batch_tile(n, length, fixed, per_batch, budget)
    else:
        tb = batch_tile
        assert n % tb == 0
    vmem_limit = _vmem_limit_bytes(fixed + tb * per_batch, capacity)

    # Weight-sized layout prep only (negligible HBM next to the activations).
    w_t = jnp.transpose(weight, (2, 1, 0)).astype(matmul_dtype)      # (K, C_in, C_out)
    params = jnp.stack([bias, gamma, beta]).astype(jnp.float32)      # (3, C_out)
    cpg = c_out // num_groups
    gid = jnp.arange(c_out, dtype=jnp.int32) // cpg
    avg = (gid[:, None] == gid[None, :]).astype(jnp.float32) / float(cpg * length)

    kernel = functools.partial(_conv1d_gn_mish_kernel, seq_len=length,
                               padding=padding, matmul_dtype=matmul_dtype)

    # TODO(synk): for very large L, additionally tile L in the grid with a K-1 halo
    # (accumulate GN sum/sum-sq in scratch, finalize under pl.when) so the per-step
    # block stays within v7x's 64 MiB VMEM independent of L.
    # TODO(synk): on v5e with C_in < 128, build a (rows, K*C_in) shifted-x slab and
    # use one (K*C_in, C_out) matmul to triple the MXU contraction depth.
    return pl.pallas_call(
        kernel,
        out_shape=jax.ShapeDtypeStruct((n, c_out, length), out_dtype),
        grid_spec=pltpu.PrefetchScalarGridSpec(
            num_scalar_prefetch=0,
            grid=(n // tb,),
            in_specs=[
                pl.BlockSpec((tb, c_in, length), lambda i: (i, 0, 0)),
                # Grid-invariant inputs.  TODO(synk): pipeline_mode=pl.Buffered(1)
                # here once verified on the target jax version (saves one VMEM copy each).
                pl.BlockSpec((k, c_in, c_out), lambda i: (0, 0, 0)),
                pl.BlockSpec((3, c_out), lambda i: (0, 0)),
                pl.BlockSpec((c_out, c_out), lambda i: (0, 0)),
            ],
            out_specs=pl.BlockSpec((tb, c_out, length), lambda i: (i, 0, 0)),
        ),
        compiler_params=pltpu.CompilerParams(
            dimension_semantics=("parallel",),
            vmem_limit_bytes=vmem_limit,
        ),
    )(x, w_t, params, avg)


def reference(x, weight, bias, gamma, beta, *, num_groups=8, padding=1,
              matmul_dtype=jnp.bfloat16):
    """Plain-JAX mirror of the PyTorch forward (conv operands rounded to the
    kernel's MXU dtype so the check isolates kernel correctness)."""
    xr = x.astype(matmul_dtype).astype(jnp.float32)
    wr = weight.astype(matmul_dtype).astype(jnp.float32)
    y = jax.lax.conv_general_dilated(
        xr, wr, window_strides=(1,), padding=[(padding, padding)],
        dimension_numbers=("NCH", "OIH", "NCH"))
    y = y + bias[None, :, None]
    n, c, l = y.shape
    yg = y.reshape(n, num_groups, -1)
    mean = yg.mean(-1, keepdims=True)
    var = ((yg - mean) ** 2).mean(-1, keepdims=True)
    yn = ((yg - mean) / jnp.sqrt(var + EPS)).reshape(n, c, l)
    z = yn * gamma[None, :, None] + beta[None, :, None]
    return z * jnp.tanh(jax.nn.softplus(z))


if __name__ == "__main__":
    N, C_in, C_out, L, K = 2, 16, 32, 24, 3
    num_groups, padding = 8, 1

    key = jax.random.PRNGKey(0)
    kx, kw, kb, kg, kbe = jax.random.split(key, 5)
    x = jax.random.normal(kx, (N, C_in, L), dtype=jnp.float32)
    weight = 0.1 * jax.random.normal(kw, (C_out, C_in, K), dtype=jnp.float32)  # PyTorch layout
    bias = 0.1 * jax.random.normal(kb, (C_out,), dtype=jnp.float32)
    gamma = 1.0 + 0.1 * jax.random.normal(kg, (C_out,), dtype=jnp.float32)
    beta = 0.1 * jax.random.normal(kbe, (C_out,), dtype=jnp.float32)

    fn = jax.jit(functools.partial(conv1d_block, num_groups=num_groups,
                                   padding=padding))
    out = jax.block_until_ready(fn(x, weight, bias, gamma, beta))
    assert out.shape == (N, C_out, L), out.shape

    ref = reference(x, weight, bias, gamma, beta,
                    num_groups=num_groups, padding=padding)
    max_err = float(jnp.max(jnp.abs(out - ref)))
    # Tolerance covers the approx EUP reciprocal in Mish and bf16 MXU operands.
    assert jnp.allclose(out, ref, rtol=5e-3, atol=5e-3), max_err

    print("KERNEL_OK")
</pallas_src>

<mosaic_0001>
module attributes {stable_mosaic.version = 11 : i64} {
  func.func @_conv1d_gn_mish_kernel(%arg0: i32, %arg1: memref<1x16x24xf32, #tpu.memory_space<vmem>>, %arg2: memref<3x16x32xbf16, #tpu.memory_space<vmem>>, %arg3: memref<3x32xf32, #tpu.memory_space<vmem>>, %arg4: memref<32x32xf32, #tpu.memory_space<vmem>>, %arg5: memref<1x32x24xf32, #tpu.memory_space<vmem>>) attributes {dimension_semantics = [#tpu.dimension_semantics<parallel>], iteration_bounds = array<i64: 2>, scalar_prefetch = 0 : i64, scratch_operands = 0 : i64, tpu.core_type = #tpu.core_type<tc>, window_params = [{transform_indices = @transform_0, window_bounds = array<i64: 1, 16, 24>}, {pipeline_mode = #tpu.pipeline_mode<synchronous>, transform_indices = @transform_1, window_bounds = array<i64: 3, 16, 32>}, {pipeline_mode = #tpu.pipeline_mode<synchronous>, transform_indices = @transform_2, window_bounds = array<i64: 3, 32>}, {pipeline_mode = #tpu.pipeline_mode<synchronous>, transform_indices = @transform_3, window_bounds = array<i64: 32, 32>}, {transform_indices = @transform_4, window_bounds = array<i64: 1, 32, 24>}]} {
    %c0 = arith.constant 0 : index
    %c0_0 = arith.constant 0 : index
    %c0_1 = arith.constant 0 : index
    %0 = vector.load %arg1[%c0, %c0_0, %c0_1] : memref<1x16x24xf32, #tpu.memory_space<vmem>>, vector<1x16x24xf32>
    %1 = tpu.transpose %0, [0, 2, 1] : vector<1x16x24xf32> -> vector<1x24x16xf32>
    %2 = vector.shape_cast %1 : vector<1x24x16xf32> to vector<24x16xf32>
    %3 = arith.truncf %2 : vector<24x16xf32> to vector<24x16xbf16>
    %c0_2 = arith.constant 0 : index
    %c0_3 = arith.constant 0 : index
    %4 = vector.load %arg3[%c0_2, %c0_3] : memref<3x32xf32, #tpu.memory_space<vmem>>, vector<3x32xf32>
    %5 = vector.extract_strided_slice %4 {offsets = [0, 0], sizes = [1, 32], strides = [1, 1]} : vector<3x32xf32> to vector<1x32xf32>
    %6 = vector.extract_strided_slice %4 {offsets = [1, 0], sizes = [1, 32], strides = [1, 1]} : vector<3x32xf32> to vector<1x32xf32>
    %7 = vector.extract_strided_slice %4 {offsets = [2, 0], sizes = [1, 32], strides = [1, 1]} : vector<3x32xf32> to vector<1x32xf32>
    %8 = tpu.iota {dimensions = array<i32: 1>} : vector<1x24x1xi32>
    %9 = vector.shape_cast %8 : vector<1x24x1xi32> to vector<24x1xi32>
    %c0_4 = arith.constant 0 : index
    %c0_5 = arith.constant 0 : index
    %c0_6 = arith.constant 0 : index
    %10 = vector.load %arg2[%c0_4, %c0_5, %c0_6] : memref<3x16x32xbf16, #tpu.memory_space<vmem>>, vector<1x16x32xbf16>
    %11 = vector.shape_cast %10 : vector<1x16x32xbf16> to vector<16x32xbf16>
    %cst = arith.constant dense<0.000000e+00> : vector<24x32xf32>
    %12 = tpu.matmul %3, %11, %cst {dimension_numbers = #tpu.dot_dimension_numbers<[1], [0], [0], [1], [0, 0, 1, 1], [], []>} : vector<24x16xbf16>, vector<16x32xbf16>, vector<24x32xf32> -> vector<24x32xf32>
    %c1_i32 = arith.constant 1 : i32
    %13 = tpu.dynamic_rotate %12 by %c1_i32 dim 0 : vector<24x32xf32>, i32 -> vector<24x32xf32>
    %c-1_i32 = arith.constant -1 : i32
    %14 = vector.broadcast %c-1_i32 : i32 to vector<24x1xi32>
    %15 = arith.addi %9, %14 : vector<24x1xi32>
    %c0_i32 = arith.constant 0 : i32
    %16 = vector.broadcast %c0_i32 : i32 to vector<24x1xi32>
    %17 = arith.cmpi sge, %15, %16 : vector<24x1xi32>
    %c24_i32 = arith.constant 24 : i32
    %18 = vector.broadcast %c24_i32 : i32 to vector<24x1xi32>
    %19 = arith.cmpi slt, %15, %18 : vector<24x1xi32>
    %20 = arith.andi %17, %19 : vector<24x1xi1>
    %cst_7 = arith.constant 0.000000e+00 : f32
    %21 = vector.shape_cast %20 : vector<24x1xi1> to vector<24x1xi1>
    %22 = vector.broadcast %21 : vector<24x1xi1> to vector<24x32xi1>
    %23 = vector.broadcast %cst_7 : f32 to vector<24x32xf32>
    %24 = arith.select %22, %13, %23 : vector<24x32xi1>, vector<24x32xf32>
    %c1 = arith.constant 1 : index
    %c0_8 = arith.constant 0 : index
    %c0_9 = arith.constant 0 : index
    %25 = vector.load %arg2[%c1, %c0_8, %c0_9] : memref<3x16x32xbf16, #tpu.memory_space<vmem>>, vector<1x16x32xbf16>
    %26 = vector.shape_cast %25 : vector<1x16x32xbf16> to vector<16x32xbf16>
    %cst_10 = arith.constant dense<0.000000e+00> : vector<24x32xf32>
    %27 = tpu.matmul %3, %26, %cst_10 {dimension_numbers = #tpu.dot_dimension_numbers<[1], [0], [0], [1], [0, 0, 1, 1], [], []>} : vector<24x16xbf16>, vector<16x32xbf16>, vector<24x32xf32> -> vector<24x32xf32>
    %28 = arith.addf %24, %27 : vector<24x32xf32>
    %c2 = arith.constant 2 : index
    %c0_11 = arith.constant 0 : index
    %c0_12 = arith.constant 0 : index
    %29 = vector.load %arg2[%c2, %c0_11, %c0_12] : memref<3x16x32xbf16, #tpu.memory_space<vmem>>, vector<1x16x32xbf16>
    %30 = vector.shape_cast %29 : vector<1x16x32xbf16> to vector<16x32xbf16>
    %cst_13 = arith.constant dense<0.000000e+00> : vector<24x32xf32>
    %31 = tpu.matmul %3, %30, %cst_13 {dimension_numbers = #tpu.dot_dimension_numbers<[1], [0], [0], [1], [0, 0, 1, 1], [], []>} : vector<24x16xbf16>, vector<16x32xbf16>, vector<24x32xf32> -> vector<24x32xf32>
    %c23_i32 = arith.constant 23 : i32
    %32 = tpu.dynamic_rotate %31 by %c23_i32 dim 0 : vector<24x32xf32>, i32 -> vector<24x32xf32>
    %c1_i32_14 = arith.constant 1 : i32
    %33 = vector.broadcast %c1_i32_14 : i32 to vector<24x1xi32>
    %34 = arith.addi %9, %33 : vector<24x1xi32>
    %c0_i32_15 = arith.constant 0 : i32
    %35 = vector.broadcast %c0_i32_15 : i32 to vector<24x1xi32>
    %36 = arith.cmpi sge, %34, %35 : vector<24x1xi32>
    %c24_i32_16 = arith.constant 24 : i32
    %37 = vector.broadcast %c24_i32_16 : i32 to vector<24x1xi32>
    %38 = arith.cmpi slt, %34, %37 : vector<24x1xi32>
    %39 = arith.andi %36, %38 : vector<24x1xi1>
    %cst_17 = arith.constant 0.000000e+00 : f32
    %40 = vector.shape_cast %39 : vector<24x1xi1> to vector<24x1xi1>
    %41 = vector.broadcast %40 : vector<24x1xi1> to vector<24x32xi1>
    %42 = vector.broadcast %cst_17 : f32 to vector<24x32xf32>
    %43 = arith.select %41, %32, %42 : vector<24x32xi1>, vector<24x32xf32>
    %44 = arith.addf %28, %43 : vector<24x32xf32>
    %45 = vector.broadcast %5 : vector<1x32xf32> to vector<24x32xf32>
    %46 = arith.addf %44, %45 : vector<24x32xf32>
    %47 = vector.shape_cast %46 : vector<24x32xf32> to vector<1x24x32xf32>
    %cst_18 = arith.constant dense<0.000000e+00> : vector<1x32xf32>
    %48 = vector.multi_reduction <add>, %47, %cst_18 [1] : vector<1x24x32xf32> to vector<1x32xf32>
    %49 = arith.mulf %47, %47 : vector<1x24x32xf32>
    %cst_19 = arith.constant dense<0.000000e+00> : vector<1x32xf32>
    %50 = vector.multi_reduction <add>, %49, %cst_19 [1] : vector<1x24x32xf32> to vector<1x32xf32>
    %51 = tpu.concatenate %48, %50 in 0 : vector<1x32xf32>, vector<1x32xf32> -> vector<2x32xf32>
    %c0_20 = arith.constant 0 : index
    %c0_21 = arith.constant 0 : index
    %52 = vector.load %arg4[%c0_20, %c0_21] : memref<32x32xf32, #tpu.memory_space<vmem>>, vector<32x32xf32>
    %cst_22 = arith.constant dense<0.000000e+00> : vector<2x32xf32>
    %53 = tpu.matmul %51, %52, %cst_22 {dimension_numbers = #tpu.dot_dimension_numbers<[1], [0], [0], [1], [0, 0, 1, 1], [], []>} : vector<2x32xf32>, vector<32x32xf32>, vector<2x32xf32> -> vector<2x32xf32>
    %54 = vector.extract_strided_slice %53 {offsets = [0, 0], sizes = [1, 32], strides = [1, 1]} : vector<2x32xf32> to vector<1x32xf32>
    %55 = vector.extract_strided_slice %53 {offsets = [1, 0], sizes = [1, 32], strides = [1, 1]} : vector<2x32xf32> to vector<1x32xf32>
    %56 = arith.mulf %54, %54 : vector<1x32xf32>
    %57 = arith.subf %55, %56 : vector<1x32xf32>
    %cst_23 = arith.constant 0.000000e+00 : f32
    %58 = vector.broadcast %cst_23 : f32 to vector<1x32xf32>
    %59 = arith.maximumf %57, %58 : vector<1x32xf32>
    %cst_24 = arith.constant 9.99999974E-6 : f32
    %60 = vector.broadcast %cst_24 : f32 to vector<1x32xf32>
    %61 = arith.addf %59, %60 : vector<1x32xf32>
    %62 = math.rsqrt %61 : vector<1x32xf32>
    %63 = arith.mulf %6, %62 : vector<1x32xf32>
    %64 = arith.mulf %54, %63 : vector<1x32xf32>
    %65 = arith.subf %7, %64 : vector<1x32xf32>
    %66 = vector.shape_cast %63 : vector<1x32xf32> to vector<1x1x32xf32>
    %67 = vector.broadcast %66 : vector<1x1x32xf32> to vector<1x24x32xf32>
    %68 = arith.mulf %47, %67 : vector<1x24x32xf32>
    %69 = vector.shape_cast %65 : vector<1x32xf32> to vector<1x1x32xf32>
    %70 = vector.broadcast %69 : vector<1x1x32xf32> to vector<1x24x32xf32>
    %71 = arith.addf %68, %70 : vector<1x24x32xf32>
    %cst_25 = arith.constant 2.000000e+01 : f32
    %72 = vector.broadcast %cst_25 : f32 to vector<1x24x32xf32>
    %73 = arith.minimumf %71, %72 : vector<1x24x32xf32>
    %74 = math.exp %73 : vector<1x24x32xf32>
    %cst_26 = arith.constant 2.000000e+00 : f32
    %75 = vector.broadcast %cst_26 : f32 to vector<1x24x32xf32>
    %76 = arith.addf %74, %75 : vector<1x24x32xf32>
    %77 = arith.mulf %74, %76 : vector<1x24x32xf32>
    %78 = arith.mulf %71, %77 : vector<1x24x32xf32>
    %cst_27 = arith.constant 2.000000e+00 : f32
    %79 = vector.broadcast %cst_27 : f32 to vector<1x24x32xf32>
    %80 = arith.addf %77, %79 : vector<1x24x32xf32>
    %81 = tpu.reciprocal %80 {approx = true} : vector<1x24x32xf32> -> vector<1x24x32xf32>
    %82 = arith.mulf %78, %81 : vector<1x24x32xf32>
    %cst_28 = arith.constant 2.000000e+01 : f32
    %83 = vector.broadcast %cst_28 : f32 to vector<1x24x32xf32>
    %84 = arith.cmpf ogt, %71, %83 : vector<1x24x32xf32>
    %85 = arith.select %84, %71, %82 : vector<1x24x32xi1>, vector<1x24x32xf32>
    %86 = tpu.transpose %85, [0, 2, 1] : vector<1x24x32xf32> -> vector<1x32x24xf32>
    %c0_29 = arith.constant 0 : index
    %c0_30 = arith.constant 0 : index
    %c0_31 = arith.constant 0 : index
    %87 = vector.load %arg5[%c0_29, %c0_30, %c0_31] : memref<1x32x24xf32, #tpu.memory_space<vmem>>, vector<1x32x24xf32>
    tpu.vector_store %arg5[%c0_29, %c0_30, %c0_31], %86 {strides = array<i32>} : memref<1x32x24xf32, #tpu.memory_space<vmem>>, vector<1x32x24xf32>,
    return
  }
  func.func @transform_0(%arg0: i32) -> (i32, i32, i32) {
    %c0_i32 = arith.constant 0 : i32
    %c0_i32_0 = arith.constant 0 : i32
    %c0_i32_1 = arith.constant 0 : i32
    return %arg0, %c0_i32, %c0_i32_0 : i32, i32, i32
  }
  func.func @transform_1(%arg0: i32) -> (i32, i32, i32) {
    %c0_i32 = arith.constant 0 : i32
    %c0_i32_0 = arith.constant 0 : i32
    %c0_i32_1 = arith.constant 0 : i32
    %c0_i32_2 = arith.constant 0 : i32
    return %c0_i32, %c0_i32_0, %c0_i32_1 : i32, i32, i32
  }
  func.func @transform_2(%arg0: i32) -> (i32, i32) {
    %c0_i32 = arith.constant 0 : i32
    %c0_i32_0 = arith.constant 0 : i32
    %c0_i32_1 = arith.constant 0 : i32
    return %c0_i32, %c0_i32_0 : i32, i32
  }
  func.func @transform_3(%arg0: i32) -> (i32, i32) {
    %c0_i32 = arith.constant 0 : i32
    %c0_i32_0 = arith.constant 0 : i32
    %c0_i32_1 = arith.constant 0 : i32
    return %c0_i32, %c0_i32_0 : i32, i32
  }
  func.func @transform_4(%arg0: i32) -> (i32, i32, i32) {
    %c0_i32 = arith.constant 0 : i32
    %c0_i32_0 = arith.constant 0 : i32
    %c0_i32_1 = arith.constant 0 : i32
    return %arg0, %c0_i32, %c0_i32_0 : i32, i32, i32
  }
}

</mosaic_0001>

<bundles_post_ra>
// kernel: conv1d_block.1
= control target key start
LH: loop header
LB: loop body
LE: loop exit
PB: predicated region body
PF: predicated region fallthrough
CT: control target
= control target key end

     0   :  { %s887_s15 = smov 0   ;;  %s953_s0 = inlined_call_operand.vmem [shape: f32[2,16,24], index: 0, kind: input, shape index: {}]   ;;  %s954_s1 = inlined_call_operand.vmem [shape: bf16[3,16,32], index: 1, kind: input, shape index: {}]   ;;  %s955_s2 = inlined_call_operand.vmem [shape: f32[3,32], index: 2, kind: input, shape index: {}]   ;;  %s956_s3 = inlined_call_operand.vmem [shape: f32[32,32], index: 3, kind: input, shape index: {}]   ;;  %s957_s4 = inlined_call_operand.vmem [shape: f32[2,32,24], index: 4, kind: output, shape index: {}]  }
   0x1 LB: > { %s747_s16 = sadd.s32 4294967295, %s857_s15   ;;  %p751_p0 = scmp.ge.s32.totalorder %s857_s15, 1  ;;  %s857_s15 = sphi %s887_s15, %s14_s15  }
   0x2   : > { %p162_p1 = scmp.lt.s32.totalorder %s857_s15, 3 }
   0x4   : > { %p163_p2 = pnand %p751_p0, %p162_p1 }
   0x5   : > { %p188_p3 = scmp.lt.s32.totalorder (!%p163_p2), %s747_s16, 1  ;;  %v834_v2 = vld [vmem:[%s954_s1] sm:$0xff] (!%p163_p2)   ;;  %v835_v3 = vld [vmem:[%s954_s1 + $0x8] sm:$0xff] (!%p163_p2)   ;;  %v836_v4 = vld [vmem:[%s954_s1 + $0x10] sm:$0xff] (!%p163_p2)   ;;  %vm248_vm0 = vcmask (!%p163_p2), 130048   ;;  %v859_v13 = vmov (!%p163_p2), 0.0|0.0   ;;  %v236_v18 = vlaneseq (!%p163_p2) }
   0x6   : > { %166 = sbr.rel (%p163_p2) target bundleno = 830 (0x33e), region = 36  ;;  %788 = vmatprep.subr.bf16.mxu0 (!%p163_p2), %v834_v2  ;;  %794 = vmatprep.subr.bf16.mxu1 (!%p163_p2), %v835_v3  ;;  %v514_v10 = vld [vmem:[%s956_s3] sm:$0xff] (!%p163_p2)  ;;  %v515_v11 = vld [vmem:[%s956_s3 + $0x8] sm:$0xff] (!%p163_p2)  ;;  %v516_v12 = vld [vmem:[%s956_s3 + $0x10] sm:$0xff] (!%p163_p2)  ;;  %vm860_vm1 = vmmov (!%p163_p2), 0   ;;  %v861_v16 = vmov (!%p163_p2), 0.0  }
   0x7   : > { %789 = vmatpush3.bf16.msra.mxu0 (!%p163_p2), %v834_v2  ;;  %795 = vmatpush3.bf16.msra.mxu1 (!%p163_p2), %v835_v3  ;;  %v818_v14 = vpack.c.bf16 (!%p163_p2), %v515_v11, %v514_v10  ;;  %v517_v15 = vld [vmem:[%s956_s3 + $0x18] sm:$0xff] (!%p163_p2)  ;;  %v922_v19 = vshrl.u32 (!%p163_p2), %v236_v18, 7  ;;  %v931_v44 = vld [vmem:[%s955_s2] sm:$0x7] (!%p163_p2)  ;;  %vm486_vm6 = vcmask (!%p163_p2), 261120   ;;  %vm512_vm7 = vcmask (!%p163_p2), 1040384  }
   0x8   : > { %800 = vmatprep.subr.bf16.mxu0 (!%p163_p2), %v836_v4  ;;  %817 = vmatprep.subr.bf16.mxu1 (!%p163_p2), %v859_v13  ;;  %v821_v17 = vpack.c.bf16 (!%p163_p2), %v517_v15, %v516_v12  ;;  %vm687_vm11 = vcmask (!%p163_p2), 195584  }
   0x9   : > { %v310_v20 = vadd.s32 (!%p163_p2), 4294967295, %v922_v19  ;;  %vm306_vm2 = vcmp.lt.s32.totalorder (!%p163_p2), %v922_v19, 1  ;;  %v239_v29 = vadd.s32 (!%p163_p2), 16, %v922_v19  ;;  %v481_v42 = vsub.s32 (!%p163_p2), 0, %v922_v19 }
   0xa   : > { %vm451_vm4 = vcmp.lt.s32.totalorder (!%p163_p2), %v922_v19, 7 }
   0xb   : > { %vm313_vm3 = vcmp.ge.s32.totalorder (!%p163_p2), %v310_v20, 0  ;;  %v457_v38 = vadd.s32 (!%p163_p2), 1, %v239_v29  ;;  %v482_v50 = vrot.slane (!%p163_p2), %v931_v44, %v481_v42 }
   0xd   : > { %s959_s16 = smov (!%p188_p3, %s747_s16), 1  ;;  %vm463_vm5 = vcmp.lt.s32.totalorder %v457_v38, 24  ;;  %v617_v38 = vsub.s32 2, %v922_v19 }
   0xe   : > { %s772_s17 = sshll.u32 %s959_s16, 4  ;;  %s773_s11 = sshll.u32 %s959_s16, 5 }
   0xf   : > { %s192_s20 = scalar_lea.vmem %s953_s0, %s772_s17  ;;  %s197_s14 = scalar_lea.vmem %s957_s4, %s773_s11 }
  0x10   : > { %v199_v0 = vld [vmem:[%s192_s20] sm:$0xff]  ;;  %v200_v1 = vld [vmem:[%s192_s20 + $0x8] sm:$0xff] }
  0x11   : > { %201 = vxpose.xlu0.b32.start [1/2] (short) (narrow) %v199_v0, 24 }
  0x15   : > { %202 = vxpose.xlu0.b32.end [2/2] (short) (narrow) %v200_v1, 24 }
  0x91   : > { %v217_v5 = vpop.trf.xlu0 }
  0x95   : > { %v218_v6 = vpop.trf.xlu0 }
  0x96   : > { %v233_v7 = vpack.c.bf16 %v218_v6, %v217_v5 }
  0x98   : > { %790 = vmatprep.mubr.msk.bf16.mxu0 %vm248_vm0, %v233_v7  ;;  %796 = vmatprep.mubr.msk.bf16.mxu1 %vm248_vm0, %v233_v7 }
  0x99   : > { %v219_v8 = vpop.trf.xlu0 }
  0x9a   : > { %v234_v9 = vpack.c.bf16 %v219_v8, %v219_v8 }
  0x9c   : > { %791 = vmatmul.mubr.msk.bf16.vlgmr.msra.gmra.mrb[0].mxu0 %vm248_vm0, %v234_v9  ;;  %797 = vmatmul.mubr.msk.bf16.vlgmr.msra.gmra.mrb[0].mxu1 %vm248_vm0, %v234_v9 }
  0x9d   : > { %801 = vmatpush3.bf16.msra.mxu0 %v836_v4  ;;  %802 = vmatprep.mubr.msk.bf16.mxu0 %vm248_vm0, %v233_v7 }
  0x9e   : > { %814 = vmatprep.mubr.msk.f32.mxu1 %vm860_vm1, %v861_v16  ;;  %819 = vmatpush3.bf16.msra.mxu1 %v818_v14 }
  0x9f   : > { %820 = vmatprep.subr.bf16.mxu1 %v859_v13 }
  0xa2   : > { %822 = vmatpush3.bf16.msra.mxu1 %v821_v17 }
  0xa4   : > { %803 = vmatmul.mubr.msk.bf16.vlgmr.msra.gmra.mrb[4].mxu0 %vm248_vm0, %v234_v9 }
 0x16f   : > { %v792_v21 = vpop.f32.mrb[0].mxu0  ;;  %v798_v22 = vpop.f32.mrb[0].mxu1 }
 0x170   : > { %v305_v23 = vrot.slane %v792_v21, 7  ;;  %v289_v24 = vpop.f32.mrb[1].mxu0  ;;  %v374_v25 = vpop.f32.mrb[1].mxu1 }
 0x171   : > { %v303_v26 = vrot.slane %v289_v24, 7  ;;  %v793_v27 = vpop.f32.mrb[2].mxu0  ;;  %v799_v28 = vpop.f32.mrb[2].mxu1 }
 0x172   : > { %v292_v30 = vpop.f32.mrb[3].mxu0  ;;  %v377_v31 = vpop.f32.mrb[3].mxu1 }
 0x173   : > { %v309_v32 = vsel %vm306_vm2, %v305_v23, %v303_v26  ;;  %v304_v33 = vrot.slane %v292_v30, 7 }
 0x174   : > { %v328_v34 = vsel %vm313_vm3, %v309_v32, 0.0 }
 0x175   : > { %v388_v35 = vadd.f32 %v374_v25, %v328_v34  ;;  %v307_v36 = vsel %vm306_vm2, %v304_v33, %v305_v23  ;;  %v308_v37 = vsel %vm306_vm2, %v303_v26, %v304_v33  ;;  %v610_v34 = vsub.s32 1, %v922_v19 }
 0x176   : > { %v390_v39 = vadd.f32 %v798_v22, %v307_v36  ;;  %v389_v40 = vadd.f32 %v377_v31, %v308_v37 }
 0x177   : > { %v804_v41 = vpop.f32.mrb[4].mxu0 }
 0x178   : > { %v450_v43 = vrot.slane %v804_v41, 1  ;;  %v434_v45 = vpop.f32.mrb[5].mxu0 }
 0x179   : > { %v448_v46 = vrot.slane %v434_v45, 1  ;;  %v805_v47 = vpop.f32.mrb[6].mxu0 }
 0x17a   : > { %v437_v48 = vpop.f32.mrb[7].mxu0 }
 0x17b   : > { %v454_v49 = vsel %vm451_vm4, %v450_v43, %v448_v46  ;;  %v449_v51 = vrot.slane %v437_v48, 1 }
 0x17c   : > { %v475_v52 = vsel %vm463_vm5, %v454_v49, 0.0 }
 0x17d   : > { %v478_v53 = vadd.f32 %v475_v52, %v390_v39  ;;  %v452_v54 = vsel %vm451_vm4, %v449_v51, %v450_v43  ;;  %v453_v55 = vsel %vm451_vm4, %v448_v46, %v449_v51 }
 0x17e   : > { %v476_v56 = vadd.f32 %v453_v55, %v388_v35  ;;  %v477_v57 = vadd.f32 %v452_v54, %v389_v40 }
 0x17f   : > { %v485_v58 = vadd.f32 %v482_v50, %v478_v53 }
 0x180   : > { %v483_v59 = vadd.f32 %v482_v50, %v476_v56  ;;  %v484_v60 = vadd.f32 %v482_v50, %v477_v57 }
 0x181   : > { %v500_v61 = vmul.f32 %v485_v58, %v485_v58  ;;  %v490_v5 = vsel %vm486_vm6, %v485_v58, 0.0 }
 0x182   : > { %v487_v62 = vsel %vm486_vm6, %v483_v59, 0.0  ;;  %v488_v63 = vsel %vm486_vm6, %v484_v60, 0.0  ;;  %v498_v0 = vmul.f32 %v483_v59, %v483_v59  ;;  %v499_v1 = vmul.f32 %v484_v60, %v484_v60 }
 0x183   : > { %v489_v2 = vadd.f32 %v488_v63, %v487_v62  ;;  %v504_v8 = vsel %vm486_vm6, %v500_v61, 0.0 }
 0x184   : > { %v501_v3 = vsel %vm486_vm6, %v498_v0, 0.0  ;;  %v502_v4 = vsel %vm486_vm6, %v499_v1, 0.0 }
 0x185   : > { %v503_v6 = vadd.f32 %v502_v4, %v501_v3  ;;  %v491_v7 = vadd.f32 %v490_v5, %v489_v2 }
 0x187   : > { %v492_v9 = vrot.slane %v491_v7, 4  ;;  %v505_v10 = vadd.f32 %v504_v8, %v503_v6 }
 0x189   : > { %v493_v11 = vadd.f32 %v492_v9, %v491_v7  ;;  %v506_v12 = vrot.slane %v505_v10, 4 }
 0x18b   : > { %v494_v13 = vrot.slane %v493_v11, 2  ;;  %v507_v14 = vadd.f32 %v506_v12, %v505_v10 }
 0x18d   : > { %v495_v15 = vadd.f32 %v494_v13, %v493_v11  ;;  %v508_v16 = vrot.slane %v507_v14, 2 }
 0x18f   : > { %v496_v17 = vrot.slane %v495_v15, 1  ;;  %v509_v18 = vadd.f32 %v508_v16, %v507_v14 }
 0x191   : > { %v510_v20 = vrot.slane %v509_v18, 1  ;;  %v497_v21 = vadd.f32 %v496_v17, %v495_v15 }
 0x193   : > { %v511_v22 = vadd.f32 %v510_v20, %v509_v18 }
 0x195   : > { %v513_v23 = vsel %vm512_vm7, %v497_v21, %v511_v22 }
 0x196   : > { %815 = vmatmul.mubr.msk.f32.vlgmr.msra.gmra.mrb[4].mxu1 %vm486_vm6, %v513_v23 }
 0x269   : > { %v587_v24 = vpop.f32.mrb[4].mxu1 }
 0x26a   : > { %v591_v25 = vmul.f32 %v587_v24, %v587_v24  ;;  %v816_v26 = vpop.f32.mrb[5].mxu1 }
 0x26c   : > { %v593_v27 = vrot.slane %v591_v25, 7 }
 0x26e   : > { %v595_v28 = vsub.f32 %v587_v24, %v593_v27 }
 0x270   : > { %v596_v29 = vmax.f32 %v595_v28, 0.0 }
 0x272   : > { %v597_v30 = vadd.f32 1e-05, %v596_v29 }
 0x274   : > { %837 = vrsqrt.f32 %v597_v30 }
 0x27e   : > { %v838_v31 = vpop.eup %837 }
 0x27f   : > { %v599_v32 = vmul.f32 %v838_v31, %v931_v44 }
 0x281   : > { %v601_v33 = vrot.slane %v599_v32, 1  ;;  %v611_v37 = vrot.slane %v599_v32, %v610_v34 }
 0x283   : > { %v603_v35 = vmul.f32 %v601_v33, %v587_v24  ;;  %v612_v41 = vmul.f32 %v611_v37, %v483_v59  ;;  %v613_v42 = vmul.f32 %v611_v37, %v484_v60  ;;  %v614_v43 = vmul.f32 %v611_v37, %v485_v58 }
 0x285   : > { %v605_v36 = vrot.slane %v603_v35, 6 }
 0x287   : > { %v607_v39 = vsub.f32 %v931_v44, %v605_v36 }
 0x289   : > { %v618_v40 = vrot.slane %v607_v39, %v617_v38 }
 0x28b   : > { %v619_v45 = vadd.f32 %v618_v40, %v612_v41  ;;  %v620_v46 = vadd.f32 %v618_v40, %v613_v42  ;;  %v621_v47 = vadd.f32 %v618_v40, %v614_v43 }
 0x28d   : > { %v622_v48 = vmin.f32 %v619_v45, 20.0  ;;  %v623_v49 = vmin.f32 %v620_v46, 20.0  ;;  %v624_v50 = vmin.f32 %v621_v47, 20.0  ;;  %vm649_vm8 = vcmp.gt.f32.partialorder %v619_v45, 20.0 }
 0x28e   : > { %vm650_vm9 = vcmp.gt.f32.partialorder %v620_v46, 20.0  ;;  %vm651_vm10 = vcmp.gt.f32.partialorder %v621_v47, 20.0 }
 0x28f   : > { %v625_v51 = vmul.f32 1.442695, %v622_v48  ;;  %v627_v52 = vmul.f32 1.442695, %v623_v49  ;;  %v629_v53 = vmul.f32 1.442695, %v624_v50 }
 0x291   : > { %839 = vpow2.f32 %v625_v51 }
 0x292   : > { %841 = vpow2.f32 %v627_v52 }
 0x293   : > { %843 = vpow2.f32 %v629_v53 }
 0x29b   : > { %v840_v54 = vpop.eup %839 }
 0x29c   : > { %v842_v19 = vpop.eup %841  ;;  %v631_v55 = vadd.f32 2.0, %v840_v54 }
 0x29d   : > { %v844_v44 = vpop.eup %843  ;;  %v632_v56 = vadd.f32 2.0, %v842_v19 }
 0x29e   : > { %v634_v57 = vmul.f32 %v840_v54, %v631_v55  ;;  %v633_v59 = vadd.f32 2.0, %v844_v44 }
 0x29f   : > { %v635_v58 = vmul.f32 %v842_v19, %v632_v56 }
 0x2a0   : > { %v640_v60 = vadd.f32 2.0, %v634_v57  ;;  %v636_v61 = vmul.f32 %v844_v44, %v633_v59  ;;  %v637_v0 = vmul.f32 %v634_v57, %v619_v45 }
 0x2a1   : > { %v641_v62 = vadd.f32 2.0, %v635_v58  ;;  %v638_v4 = vmul.f32 %v635_v58, %v620_v46 }
 0x2a2   : > { %845 = vrcp.f32 %v640_v60  ;;  %v642_v63 = vadd.f32 2.0, %v636_v61  ;;  %v639_v8 = vmul.f32 %v636_v61, %v621_v47 }
 0x2a3   : > { %847 = vrcp.f32 %v641_v62 }
 0x2a4   : > { %849 = vrcp.f32 %v642_v63 }
 0x2ac   : > { %v846_v1 = vpop.eup %845 }
 0x2ad   : > { %v848_v2 = vpop.eup %847  ;;  %v646_v3 = vmul.f32 %v846_v1, %v637_v0 }
 0x2ae   : > { %v647_v6 = vmul.f32 %v848_v2, %v638_v4  ;;  %v850_v7 = vpop.eup %849 }
 0x2af   : > { %v652_v5 = vsel %vm649_vm8, %v619_v45, %v646_v3  ;;  %v648_v10 = vmul.f32 %v850_v7, %v639_v8 }
 0x2b0   : > { %655 = vxpose.xlu1.b32.start [1/3] (short) (narrow) %v652_v5, 32  ;;  %v653_v9 = vsel %vm650_vm9, %v620_v46, %v647_v6 }
 0x2b1   : > { %v654_v11 = vsel %vm651_vm10, %v621_v47, %v648_v10 }
 0x2b4   : > { %656 = vxpose.xlu1.b32.cont [2/3] (short) (narrow) %v653_v9, 32 }
 0x2b8   : > { %657 = vxpose.xlu1.b32.end [3/3] (short) (narrow) %v654_v11, 32 }
 0x330   : > { %v671_v12 = vpop.trf.xlu1 }
 0x331   : > { %688 = vst.msk [vmem:[%s197_s14] sm:$0xff] %vm687_vm11, %v671_v12 }
 0x334   : > { %v672_v13 = vpop.trf.xlu1 }
 0x335   : > { %689 = vst.msk [vmem:[%s197_s14 + $0x8] sm:$0xff] %vm687_vm11, %v672_v13 }
 0x338   : > { %v673_v14 = vpop.trf.xlu1 }
 0x339   : > { %690 = vst.msk [vmem:[%s197_s14 + $0x10] sm:$0xff] %vm687_vm11, %v673_v14 }
 0x33c   : > { %v674_v15 = vpop.trf.xlu1 }
 0x33d   : > { %691 = vst.msk [vmem:[%s197_s14 + $0x18] sm:$0xff] %vm687_vm11, %v674_v15 }
 0x33e PF: > { %s14_s15 = sadd.s32 1, %s857_s15  }
 0x33f   : > { %p11_p4 = scmp.ge.s32.totalorder %s14_s15, 4  }
 0x341   :  { %13 = sbr.rel (!%p11_p4) target bundleno = 1 (0x1), region = 68 }

</bundles_post_ra>
